<compile_context>
chip_gen: v5e
topology: v5e:2x2
jax: 0.10.0
libtpu: 0.0.40
codegen_flags: <defaults>
</compile_context>

<pallas_src>
import math

import jax
import jax.numpy as jnp
import numpy as np
from jax.experimental import pallas as pl
from jax.experimental.pallas import tpu as pltpu

EPS = 1e-10


# ------------------------------------------------------------------ helpers --
def _cdiv(a, b):
    return -(-a // b)


def _round_up(n, m):
    return _cdiv(n, m) * m


def _sublane_multiple(itemsize):
    # sub-32-bit dtypes pack along sublanes: 8 rows f32, 16 bf16, 32 int8/fp8
    return max(8, 32 // int(itemsize))


def _vmem_capacity_bytes():
    try:
        return int(pltpu.get_tpu_info().vmem_capacity_bytes)
    except Exception:
        return 64 << 20  # conservative (v7x-sized) fallback


def _vmem_need_bytes(rows, tc, itemsize):
    """Scoped-VMEM estimate for one pipelined row/T block.

    2x double-buffered x-in + y-out data blocks, one packed (rows, 2) f32
    stats block (lane-padded to (rows, 128) in VMEM, double-buffered), ~2
    tile-sized f32 kernel temporaries, plus headroom for internal scratch.
    """
    data = rows * tc * itemsize
    stat = rows * 128 * 4
    temp = rows * tc * 4
    return 4 * data + 2 * stat + 2 * temp + (2 << 20)


def _plan_tiles(n_rows, t, itemsize, *, allow_t_split=False, max_block_bytes=None):
    """Pick (rows, tc): row tile and T chunk size.

    tc == t : a block carries the whole series (single-pass normalize kernel).
    tc <  t : T is processed in lane-aligned chunks (wrappers pad T to a
              multiple of tc); used for very long series, or to engage both
              TensorCores for small-N elementwise calls.
    """
    sub = _sublane_multiple(itemsize)
    vmem = _vmem_capacity_bytes()
    budget = int(0.70 * vmem)
    headroom = 2 << 20
    target = int(max_block_bytes) if max_block_bytes else (8 << 20)
    two_cores = vmem <= (64 << 20)  # v7x-sized VMEM => 2 TensorCores per chip

    # --- T must be chunked if even a minimal (sub x T) block busts the budget
    if sub * t * itemsize > target or _vmem_need_bytes(sub, t, itemsize) > budget:
        per_col = sub * (4 * itemsize + 2 * 4)  # data buffers + f32 temps / col
        tc_cap = (budget - headroom - 2 * sub * 128 * 4) // max(per_col, 1)
        tc = int(min(tc_cap, target // (sub * itemsize)))
        tc = max(tc // 128 * 128, 128)
        tc = min(tc, _round_up(t, 128))
        return sub, tc

    # --- full-T plan: choose the row tile -----------------------------------
    rows = max(sub, (target // (t * itemsize)) // sub * sub)
    # keep >= ~8 grid steps, but never shrink a block below ~2 MiB to do so
    steps_rows = _round_up(_cdiv(n_rows, 8), sub)
    if steps_rows * t * itemsize >= (2 << 20):
        rows = min(rows, steps_rows)
    # on 2-TensorCore parts make sure there are >= 2 row blocks when possible
    if two_cores and n_rows >= 2 * sub:
        rows = min(rows, _round_up(_cdiv(n_rows, 2), sub))
    rows = min(rows, _round_up(n_rows, sub))
    # cap by the VMEM budget (counts lane-padded stat buffers + kernel temps)
    per_row = 4 * t * itemsize + 2 * t * 4 + 2 * 128 * 4
    rows_cap = max(sub, ((budget - headroom) // per_row) // sub * sub)
    rows = max(sub, min(rows, rows_cap))

    tc = t
    # elementwise kernels only: a lone row block leaves a TensorCore idle --
    # split T instead (the stats block index is unchanged across T blocks)
    if allow_t_split and two_cores and _cdiv(n_rows, rows) < 2 and t >= 256:
        half = _round_up(_cdiv(t, 2), 128)
        if half < t:
            tc = half
    return rows, tc


def _compiler_params(rows, tc, itemsize, n_axes, *, reduce_last=False):
    vmem = _vmem_capacity_bytes()
    need = _vmem_need_bytes(rows, tc, itemsize)
    # capacity-relative cap, but never clamp below the computed need
    limit = min(max(need + (8 << 20), 32 << 20), int(0.80 * vmem))
    limit = max(limit, need)
    sems = ["parallel"] * n_axes
    if reduce_last:
        sems[-1] = "arbitrary"
    return pltpu.CompilerParams(
        dimension_semantics=tuple(sems),
        vmem_limit_bytes=int(limit),
    )


# ------------------------------------------------------------------ kernels --
def _normalize_kernel(x_ref, y_ref, stats_ref):
    """One (rows, T) block: two-pass moments + normalize (single HBM read)."""
    x = x_ref[...].astype(jnp.float32)
    inv_t = 1.0 / x.shape[-1]
    mean = jnp.sum(x, axis=-1, keepdims=True) * inv_t           # (R, 1)
    d = x - mean
    var = jnp.sum(d * d, axis=-1, keepdims=True) * inv_t        # exact, >= 0
    factor = jnp.sqrt(jnp.sqrt(var)) + EPS                      # sqrt(std) + eps
    inv_f = pl.reciprocal(factor, approx=False)                 # per-row, not per-elem
    y_ref[...] = (d * inv_f).astype(y_ref.dtype)
    stats_ref[:, 0:1] = mean
    stats_ref[:, 1:2] = factor


def _make_stats_chunk_kernel(t_total, tc):
    """Chunked-T moments with a Chan/Welford merge (numerically stable)."""

    def kernel(x_ref, stats_ref, cnt_sc, mean_sc, m2_sc):
        j = pl.program_id(1)

        @pl.when(j == 0)
        def _init():
            cnt_sc[...] = jnp.zeros_like(cnt_sc)
            mean_sc[...] = jnp.zeros_like(mean_sc)
            m2_sc[...] = jnp.zeros_like(m2_sc)

        x = x_ref[...].astype(jnp.float32)                      # (R, tc)
        col = j * tc + jax.lax.broadcasted_iota(jnp.int32, x.shape, 1)
        valid = col < t_total                                   # ragged-tail mask
        cnt_c = jnp.sum(valid.astype(jnp.float32), axis=-1, keepdims=True)
        mean_c = jnp.sum(jnp.where(valid, x, 0.0), axis=-1, keepdims=True) / cnt_c
        d = jnp.where(valid, x - mean_c, 0.0)
        m2_c = jnp.sum(d * d, axis=-1, keepdims=True)

        n_a = cnt_sc[...]
        mean_a = mean_sc[...]
        m2_a = m2_sc[...]
        n_new = n_a + cnt_c
        delta = mean_c - mean_a
        mean_new = mean_a + delta * (cnt_c / n_new)
        m2_new = m2_a + m2_c + (delta * delta) * (n_a * cnt_c / n_new)
        cnt_sc[...] = n_new
        mean_sc[...] = mean_new
        m2_sc[...] = m2_new

        @pl.when(j == pl.num_programs(1) - 1)
        def _finish():
            var = jnp.maximum(m2_new / n_new, 0.0)
            factor = jnp.sqrt(jnp.sqrt(var)) + EPS
            stats_ref[:, 0:1] = mean_new
            stats_ref[:, 1:2] = factor

    return kernel


def _scale_kernel(x_ref, stats_ref, y_ref):
    # y = (x - means) / factors; packed stats: [:, 0] = mean, [:, 1] = factor
    x = x_ref[...].astype(jnp.float32)
    st = stats_ref[...]
    inv_f = pl.reciprocal(st[:, 1:2], approx=False)
    y_ref[...] = ((x - st[:, 0:1]) * inv_f).astype(y_ref.dtype)


def _upscale_kernel(x_ref, stats_ref, y_ref):
    # y = x * factors + means
    x = x_ref[...].astype(jnp.float32)
    st = stats_ref[...]
    y_ref[...] = (x * st[:, 1:2] + st[:, 0:1]).astype(y_ref.dtype)


# ------------------------------------------------------------ pallas drivers --
def _normalize_pallas(xf, rows):
    n_pad, t = xf.shape
    itemsize = jnp.dtype(xf.dtype).itemsize
    return pl.pallas_call(
        _normalize_kernel,
        out_shape=(
            jax.ShapeDtypeStruct((n_pad, t), xf.dtype),
            jax.ShapeDtypeStruct((n_pad, 2), jnp.float32),
        ),
        grid=(n_pad // rows,),
        in_specs=[pl.BlockSpec((rows, t), lambda i: (i, 0))],
        out_specs=(
            pl.BlockSpec((rows, t), lambda i: (i, 0)),
            pl.BlockSpec((rows, 2), lambda i: (i, 0)),
        ),
        compiler_params=_compiler_params(rows, t, itemsize, 1),
    )(xf)


def _stats_chunked_pallas(xf, rows, tc, t_total):
    n_pad, t_pad = xf.shape
    itemsize = jnp.dtype(xf.dtype).itemsize
    return pl.pallas_call(
        _make_stats_chunk_kernel(t_total, tc),
        out_shape=jax.ShapeDtypeStruct((n_pad, 2), jnp.float32),
        grid=(n_pad // rows, t_pad // tc),
        in_specs=[pl.BlockSpec((rows, tc), lambda i, j: (i, j))],
        out_specs=pl.BlockSpec((rows, 2), lambda i, j: (i, 0)),
        scratch_shapes=[
            pltpu.VMEM((rows, 1), jnp.float32),
            pltpu.VMEM((rows, 1), jnp.float32),
            pltpu.VMEM((rows, 1), jnp.float32),
        ],
        compiler_params=_compiler_params(rows, tc, itemsize, 2, reduce_last=True),
    )(xf)


def _affine_pallas(kernel, xf, stats, rows, tc):
    n_pad, t_pad = xf.shape
    itemsize = jnp.dtype(xf.dtype).itemsize
    return pl.pallas_call(
        kernel,
        out_shape=jax.ShapeDtypeStruct((n_pad, t_pad), xf.dtype),
        grid=(n_pad // rows, t_pad // tc),
        in_specs=[
            pl.BlockSpec((rows, tc), lambda i, j: (i, j)),
            pl.BlockSpec((rows, 2), lambda i, j: (i, 0)),
        ],
        out_specs=pl.BlockSpec((rows, tc), lambda i, j: (i, j)),
        compiler_params=_compiler_params(rows, tc, itemsize, 2),
    )(xf, stats)


# --------------------------------------------------------------- public API --
def _flatten(x):
    shape = x.shape
    t = shape[-1]
    n = int(math.prod(shape[:-1]))
    return x.reshape(n, t), n, t, shape


def ts_scaler_normalize(x, *, max_block_bytes=None):
    """Returns (y, means, factors) with y = (x - means) / factors."""
    xf, n, t, shape = _flatten(x)
    itemsize = jnp.dtype(x.dtype).itemsize
    rows, tc = _plan_tiles(n, t, itemsize, allow_t_split=False,
                           max_block_bytes=max_block_bytes)
    n_pad = _round_up(n, rows)
    t_pad = _round_up(t, tc)
    if n_pad != n or t_pad != t:
        xf = jnp.pad(xf, ((0, n_pad - n), (0, t_pad - t)))

    if tc == t:
        y, stats = _normalize_pallas(xf, rows)
    else:
        # long series: chunked (Chan-merge) stats pass, then a chunked apply
        stats = _stats_chunked_pallas(xf, rows, tc, t)
        y = _affine_pallas(_scale_kernel, xf, stats, rows, tc)

    y = y[:n, :t].reshape(shape)
    means = stats[:n, 0:1].reshape(shape[:-1] + (1,))
    factors = stats[:n, 1:2].reshape(shape[:-1] + (1,))
    return y, means, factors


def _apply_affine(kernel, x, factors, means, *, max_block_bytes=None):
    xf, n, t, shape = _flatten(x)
    itemsize = jnp.dtype(x.dtype).itemsize
    rows, tc = _plan_tiles(n, t, itemsize, allow_t_split=True,
                           max_block_bytes=max_block_bytes)
    n_pad = _round_up(n, rows)
    t_pad = _round_up(t, tc)
    # packed per-row stats: column 0 = mean, column 1 = factor
    stats = jnp.concatenate(
        [jnp.asarray(means, jnp.float32).reshape(n, 1),
         jnp.asarray(factors, jnp.float32).reshape(n, 1)],
        axis=-1,
    )
    if n_pad != n or t_pad != t:
        xf = jnp.pad(xf, ((0, n_pad - n), (0, t_pad - t)))
        stats = jnp.pad(stats, ((0, n_pad - n), (0, 0)), constant_values=1.0)
    y = _affine_pallas(kernel, xf, stats, rows, tc)
    return y[:n, :t].reshape(shape)


def ts_scaler_upscale(x, factors, means, *, max_block_bytes=None):
    """y = x * factors + means (the normalize=False branch)."""
    return _apply_affine(_upscale_kernel, x, factors, means,
                         max_block_bytes=max_block_bytes)


def ts_scaler_scale(x, factors, means, *, max_block_bytes=None):
    """y = (x - means) / factors, fused into one elementwise pass."""
    return _apply_affine(_scale_kernel, x, factors, means,
                         max_block_bytes=max_block_bytes)


# ----------------------------------------------------------------- the module --
class TSScaler:
    """JAX/Pallas port of _TSScaler (stateful wrapper; kernels do the math)."""

    def __init__(self):
        self.factors = None
        self.means = None
        self.eps = EPS
        self.fitted = False

    def __call__(self, x, normalize=True):
        if normalize:
            y, means, factors = ts_scaler_normalize(x)
            self.means, self.factors, self.fitted = means, factors, True
            return y
        assert self.fitted, "Unknown scale! Fit this"
        # TODO(synk): the torch 4-D upscale branch sets means = factors[..., None]
        # (an upstream bug); only the stored-stats (3-D) path is implemented here.
        return ts_scaler_upscale(x, self.factors, self.means)

    def scale(self, x):
        return ts_scaler_scale(x, self.factors, self.means)

    def upscale(self, x):
        return self(x, False)


# --------------------------------------------------------------------- main --
if __name__ == "__main__":
    key = jax.random.PRNGKey(0)

    def reference(x):
        xf = x.astype(jnp.float32)
        means = jnp.mean(xf, axis=-1, keepdims=True)
        std = jnp.sqrt(jnp.mean((xf - means) ** 2, axis=-1, keepdims=True))
        factors = jnp.sqrt(std) + EPS
        return (xf - means) / factors, means, factors

    # --- class-based flow (matches the torch module usage) -------------------
    for (b, c, t) in [(2, 4, 128), (3, 5, 96)]:
        key, sk = jax.random.split(key)
        x = jax.random.normal(sk, (b, c, t), dtype=jnp.float32) * 3.0 + 1.5
        scaler = TSScaler()
        y = jax.block_until_ready(scaler(x, normalize=True))
        y_ref, m_ref, f_ref = reference(x)
        assert jnp.allclose(y, y_ref, atol=1e-3, rtol=1e-3), "normalize mismatch"
        assert jnp.allclose(scaler.means, m_ref, atol=1e-4, rtol=1e-4), "means mismatch"
        assert jnp.allclose(scaler.factors, f_ref, atol=1e-4, rtol=1e-4), "factors mismatch"
        x_back = jax.block_until_ready(scaler.upscale(y))
        assert jnp.allclose(x_back, x, atol=1e-3, rtol=1e-3), "upscale mismatch"
        y2 = jax.block_until_ready(scaler.scale(x))
        assert jnp.allclose(y2, y_ref, atol=1e-3, rtol=1e-3), "scale mismatch"

    # --- bf16 inputs (exercises the 16-row sublane-packing multiple) ---------
    key, sk = jax.random.split(key)
    xb = (jax.random.normal(sk, (2, 4, 128), dtype=jnp.float32) * 3.0 + 1.5
          ).astype(jnp.bfloat16)
    yb, mb, fb = ts_scaler_normalize(xb)
    jax.block_until_ready(yb)
    yb_ref, mb_ref, fb_ref = reference(xb)
    assert jnp.allclose(yb.astype(jnp.float32), yb_ref, atol=2e-2, rtol=2e-2), "bf16 y"
    assert jnp.allclose(mb, mb_ref, atol=1e-3, rtol=1e-3), "bf16 means"
    assert jnp.allclose(fb, fb_ref, atol=1e-3, rtol=1e-3), "bf16 factors"

    # --- forced chunked-T path (Chan-merge stats + 2-D apply grid) -----------
    key, sk = jax.random.split(key)
    xc = jax.random.normal(sk, (2, 3, 400), dtype=jnp.float32) * 2.0 - 0.5
    yc, mc, fc = ts_scaler_normalize(xc, max_block_bytes=4096)
    jax.block_until_ready(yc)
    yc_ref, mc_ref, fc_ref = reference(xc)
    assert jnp.allclose(yc, yc_ref, atol=1e-3, rtol=1e-3), "chunked y"
    assert jnp.allclose(mc, mc_ref, atol=1e-4, rtol=1e-4), "chunked means"
    assert jnp.allclose(fc, fc_ref, atol=1e-4, rtol=1e-4), "chunked factors"
    xc_back = ts_scaler_upscale(yc, fc, mc, max_block_bytes=4096)
    jax.block_until_ready(xc_back)
    assert jnp.allclose(xc_back, xc, atol=1e-3, rtol=1e-3), "chunked upscale"

    # --- numerical robustness: large mean relative to std --------------------
    key, sk = jax.random.split(key)
    xr = 1024.0 + 0.1 * jax.random.normal(sk, (2, 4, 256), dtype=jnp.float32)
    yr, mr, fr = ts_scaler_normalize(xr)
    jax.block_until_ready(yr)
    xr64 = np.asarray(xr, dtype=np.float64)
    m64 = xr64.mean(axis=-1, keepdims=True)
    f64 = np.sqrt(np.sqrt(((xr64 - m64) ** 2).mean(axis=-1, keepdims=True))) + EPS
    assert np.allclose(np.asarray(mr), m64, rtol=1e-4, atol=0.0), "large-mean means"
    assert np.allclose(np.asarray(fr), f64, rtol=2e-2, atol=1e-5), "large-mean factors"

    # --- small-N (possible T-split for the elementwise kernels on 2-TC parts)
    key, sk = jax.random.split(key)
    xs = jax.random.normal(sk, (1, 1, 512), dtype=jnp.float32) * 1.7 + 0.3
    ys, ms, fs = ts_scaler_normalize(xs)
    ys2 = ts_scaler_scale(xs, fs, ms)
    jax.block_until_ready(ys2)
    assert jnp.allclose(ys, ys2, atol=1e-5, rtol=1e-5), "small-N scale"
    ys_ref, _, _ = reference(xs)
    assert jnp.allclose(ys, ys_ref, atol=1e-3, rtol=1e-3), "small-N normalize"

    print("KERNEL_OK")
</pallas_src>

<mosaic_0001>
module attributes {stable_mosaic.version = 11 : i64} {
  func.func @_normalize_kernel(%arg0: i32, %arg1: memref<8x128xf32, #tpu.memory_space<vmem>>, %arg2: memref<8x128xf32, #tpu.memory_space<vmem>>, %arg3: memref<8x2xf32, #tpu.memory_space<vmem>>) attributes {dimension_semantics = [#tpu.dimension_semantics<parallel>], iteration_bounds = array<i64: 1>, scalar_prefetch = 0 : i64, scratch_operands = 0 : i64, tpu.core_type = #tpu.core_type<tc>, window_params = [{transform_indices = @transform_0, window_bounds = array<i64: 8, 128>}, {transform_indices = @transform_1, window_bounds = array<i64: 8, 128>}, {transform_indices = @transform_2, window_bounds = array<i64: 8, 2>}]} {
    %c0 = arith.constant 0 : index
    %c0_0 = arith.constant 0 : index
    %0 = vector.load %arg1[%c0, %c0_0] : memref<8x128xf32, #tpu.memory_space<vmem>>, vector<8x128xf32>
    %cst = arith.constant dense<0.000000e+00> : vector<8xf32>
    %1 = vector.multi_reduction <add>, %0, %cst [1] : vector<8x128xf32> to vector<8xf32>
    %2 = vector.shape_cast %1 : vector<8xf32> to vector<8x1xf32>
    %cst_1 = arith.constant 7.812500e-03 : f32
    %3 = vector.broadcast %cst_1 : f32 to vector<8x1xf32>
    %4 = arith.mulf %2, %3 : vector<8x1xf32>
    %5 = vector.broadcast %4 : vector<8x1xf32> to vector<8x128xf32>
    %6 = arith.subf %0, %5 : vector<8x128xf32>
    %7 = arith.mulf %6, %6 : vector<8x128xf32>
    %cst_2 = arith.constant dense<0.000000e+00> : vector<8xf32>
    %8 = vector.multi_reduction <add>, %7, %cst_2 [1] : vector<8x128xf32> to vector<8xf32>
    %9 = vector.shape_cast %8 : vector<8xf32> to vector<8x1xf32>
    %cst_3 = arith.constant 7.812500e-03 : f32
    %10 = vector.broadcast %cst_3 : f32 to vector<8x1xf32>
    %11 = arith.mulf %9, %10 : vector<8x1xf32>
    %12 = math.sqrt %11 : vector<8x1xf32>
    %13 = math.sqrt %12 : vector<8x1xf32>
    %cst_4 = arith.constant 1.000000e-10 : f32
    %14 = vector.broadcast %cst_4 : f32 to vector<8x1xf32>
    %15 = arith.addf %13, %14 : vector<8x1xf32>
    %16 = tpu.reciprocal %15 : vector<8x1xf32> -> vector<8x1xf32>
    %17 = vector.broadcast %16 : vector<8x1xf32> to vector<8x128xf32>
    %18 = arith.mulf %6, %17 : vector<8x128xf32>
    %c0_5 = arith.constant 0 : index
    %c0_6 = arith.constant 0 : index
    %19 = vector.load %arg2[%c0_5, %c0_6] : memref<8x128xf32, #tpu.memory_space<vmem>>, vector<8x128xf32>
    tpu.vector_store %arg2[%c0_5, %c0_6], %18 {strides = array<i32>} : memref<8x128xf32, #tpu.memory_space<vmem>>, vector<8x128xf32>,
    %c0_7 = arith.constant 0 : index
    %c0_8 = arith.constant 0 : index
    %20 = vector.load %arg3[%c0_7, %c0_8] : memref<8x2xf32, #tpu.memory_space<vmem>>, vector<8x1xf32>
    tpu.vector_store %arg3[%c0_7, %c0_8], %4 {strides = array<i32>} : memref<8x2xf32, #tpu.memory_space<vmem>>, vector<8x1xf32>,
    %c0_9 = arith.constant 0 : index
    %c1 = arith.constant 1 : index
    %21 = vector.load %arg3[%c0_9, %c1] : memref<8x2xf32, #tpu.memory_space<vmem>>, vector<8x1xf32>
    tpu.vector_store %arg3[%c0_9, %c1], %15 {strides = array<i32>} : memref<8x2xf32, #tpu.memory_space<vmem>>, vector<8x1xf32>,
    return
  }
  func.func @transform_0(%arg0: i32) -> (i32, i32) {
    %c0_i32 = arith.constant 0 : i32
    %c0_i32_0 = arith.constant 0 : i32
    return %arg0, %c0_i32 : i32, i32
  }
  func.func @transform_1(%arg0: i32) -> (i32, i32) {
    %c0_i32 = arith.constant 0 : i32
    %c0_i32_0 = arith.constant 0 : i32
    return %arg0, %c0_i32 : i32, i32
  }
  func.func @transform_2(%arg0: i32) -> (i32, i32) {
    %c0_i32 = arith.constant 0 : i32
    %c0_i32_0 = arith.constant 0 : i32
    return %arg0, %c0_i32 : i32, i32
  }
}

</mosaic_0001>

<bundles_post_ra>
// kernel: tpu_custom_call.1
= control target key start
LH: loop header
LB: loop body
LE: loop exit
PB: predicated region body
PF: predicated region fallthrough
CT: control target
= control target key end

     0   :  { %8 = vsyncpa [#allocation3], 0  ;;  %s189_s0 = inlined_call_operand.hbm [shape: f32[8,128], index: 0, kind: input, shape index: {}]   ;;  %s190_s1 = inlined_call_operand.hbm [shape: f32[8,128], index: 1, kind: output, shape index: {0}]   ;;  %s191_s2 = inlined_call_operand.vmem [shape: f32[8,2], index: 2, kind: output, shape index: {1}]  }
   0x1   :  { %9 = vsyncpa [#allocation4], 0  ;;  %s15_s11 = sshll.u32 %s189_s0, 4  ;;  %s160_s12 = smov [#allocation2]   ;;  %s16_s11 = int_to_ptr.hbm [resolvable:$true] %s15_s11 }
   0x2   :  { %s17_s13 = sshll.u32 %s160_s12, 4  ;;  %s18_s13 = int_to_ptr.vmem [resolvable:$true] %s17_s13 }
   0x3   :  { %20 = dma.hbm_to_vmem [thread:$0]  %s16_s11, 128, %s18_s13, [#allocation3]  }
   0x4   :  { %156 = dma.done.wait [#allocation3], 128  }
   0x5   :  { %157 = vsyncadd [#allocation3], 4294967168  ;;  %v25_v0 = vld [vmem:[#allocation2] sm:$0xff]  ;;  %vm75_vm0 = vcmask 7168   ;;  %vm77_vm5 = vcmask 15368   ;;  %s161_s17 = smov [#allocation5]  }
   0x6   :  { %26 = vadd.xlane.f32.xlu0 %v25_v0  ;;  %s84_s18 = sshll.u32 %s161_s17, 4  ;;  %s86_s21 = sshll.u32 %s190_s1, 4  ;;  %s85_s18 = int_to_ptr.vmem [resolvable:$true] %s84_s18  ;;  %s87_s21 = int_to_ptr.hbm [resolvable:$true] %s86_s21 }
  0x79   :  { %v27_v1 = vpop.xlane.xlu0 %26 }
  0x7a   :  { %v28_v2 = vmul.f32 0.0078125, %v27_v1 }
  0x7c   :  { %v29_v3 = vsub.f32 %v25_v0, %v28_v2  ;;  %76 = vst.msk [vmem:[%s191_s2] sm:$0xff] %vm75_vm0, %v28_v2 }
  0x7e   :  { %v30_v4 = vmul.f32 %v29_v3, %v29_v3 }
  0x80   :  { %31 = vadd.xlane.f32.xlu0 %v30_v4 }
  0xf3   :  { %v32_v5 = vpop.xlane.xlu0 %31 }
  0xf4   :  { %v33_v6 = vmul.f32 0.0078125, %v32_v5 }
  0xf6   :  { %102 = vrsqrt.f32 %v33_v6  ;;  %vm41_vm1 = vcmp.eq.f32.partialorder %v33_v6, inf  ;;  %v44_v14 = vand.u32 2147483648, %v33_v6  ;;  %vm43_vm2 = vcmp.eq.f32.partialorder %v33_v6, 0.0 }
  0xfc   :  { %v103_v7 = vpop.eup %102 }
  0xfd   :  { %v35_v8 = vmul.f32 %v103_v7, %v33_v6 }
  0xff   :  { %v36_v9 = vmul.f32 %v103_v7, %v35_v8 }
 0x101   :  { %v37_v10 = vmul.f32 0.5, %v36_v9 }
 0x103   :  { %v38_v11 = vsub.f32 1.5, %v37_v10 }
 0x105   :  { %v39_v12 = vmul.f32 %v103_v7, %v38_v11 }
 0x107   :  { %v40_v13 = vmul.f32 %v39_v12, %v33_v6 }
 0x109   :  { %v42_v15 = vsel %vm41_vm1, %v33_v6, %v40_v13 }
 0x10a   :  { %v45_v16 = vsel %vm43_vm2, %v44_v14, %v42_v15 }
 0x10b   :  { %104 = vrsqrt.f32 %v45_v16  ;;  %vm53_vm3 = vcmp.eq.f32.partialorder %v45_v16, inf  ;;  %v56_v24 = vand.u32 2147483648, %v45_v16  ;;  %vm55_vm4 = vcmp.eq.f32.partialorder %v45_v16, 0.0 }
 0x111   :  { %v105_v17 = vpop.eup %104 }
 0x112   :  { %v47_v18 = vmul.f32 %v105_v17, %v45_v16 }
 0x114   :  { %v48_v19 = vmul.f32 %v105_v17, %v47_v18 }
 0x116   :  { %v49_v20 = vmul.f32 0.5, %v48_v19 }
 0x118   :  { %v50_v21 = vsub.f32 1.5, %v49_v20 }
 0x11a   :  { %v51_v22 = vmul.f32 %v105_v17, %v50_v21 }
 0x11c   :  { %v52_v23 = vmul.f32 %v51_v22, %v45_v16 }
 0x11e   :  { %v54_v25 = vsel %vm53_vm3, %v45_v16, %v52_v23 }
 0x11f   :  { %v57_v26 = vsel %vm55_vm4, %v56_v24, %v54_v25 }
 0x120   :  { %v58_v27 = vadd.f32 1e-10, %v57_v26 }
 0x122   :  { %106 = vrcp.f32 %v58_v27  ;;  %78 = vst.msk [vmem:[%s191_s2] sm:$0xff] %vm77_vm5, %v58_v27  ;;  %v70_v31 = vand.u32 2147483648, %v58_v27  ;;  %v68_v33 = vand.u32 2147483647, %v58_v27  ;;  %vm64_vm7 = vweird.f32 %v58_v27 }
 0x124   :  { %v71_v35 = vor.u32 1.1754944e-38, %v70_v31  ;;  %vm69_vm9 = vcmp.eq.f32.partialorder %v68_v33, 8.507059e+37 }
 0x128   :  { %v107_v28 = vpop.eup %106 }
 0x129   :  { %v60_v29 = vmul.f32 %v107_v28, %v58_v27  ;;  %vm65_vm6 = vweird.f32 %v107_v28 }
 0x12a   :  { %vm66_vm8 = vmor %vm64_vm7, %vm65_vm6 }
 0x12b   :  { %v61_v30 = vsub.f32 1.0, %v60_v29 }
 0x12d   :  { %v62_v32 = vmul.f32 %v107_v28, %v61_v30 }
 0x12f   :  { %v63_v34 = vadd.f32 %v107_v28, %v62_v32 }
 0x131   :  { %v67_v36 = vsel %vm66_vm8, %v107_v28, %v63_v34 }
 0x132   :  { %v72_v37 = vsel %vm69_vm9, %v71_v35, %v67_v36 }
 0x133   :  { %v73_v38 = vmul.f32 %v72_v37, %v29_v3 }
 0x135   :  { %74 = vst [vmem:[#allocation5] sm:$0xff] %v73_v38 }
 0x136   :  { %89 = dma.vmem_to_hbm [thread:$0]  %s85_s18, 128, %s87_s21, [#allocation4]  }
 0x137   :  { %158 = dma.done.wait [#allocation4], 128  }
 0x138   :  { %159 = vsyncadd [#allocation4], 4294967168 }
 0x139   :  { %98 = vsyncpa [#allocation3], 1 }
 0x13a   :  { %99 = vsyncpa [#allocation4], 1 }

</bundles_post_ra>
